<compile_context>
chip_gen: v7x
topology: tpu7x:2x2x1
jax: 0.10.0
libtpu: 0.0.40
codegen_flags: <defaults>
</compile_context>

<pallas_src>
import functools
import math

import numpy as np
import jax
import jax.numpy as jnp
from jax import lax
from jax.experimental import pallas as pl
from jax.experimental.pallas import tpu as pltpu


def _gaussian_taps(window_size, sigma=1.5):
    """Matches PyTorch gaussian(window_size, sigma): f32, normalized to sum 1."""
    vals = np.array(
        [math.exp(-((x - window_size // 2) ** 2) / (2.0 * sigma ** 2))
         for x in range(window_size)],
        dtype=np.float32)
    return vals / vals.sum(dtype=np.float32)


def _banded_matrices(taps, H, W, K):
    """Banded matrices so that valid separable conv == Bv @ (X @ Bh)."""
    Ho, Wo = H - K + 1, W - K + 1
    bh = np.zeros((W, Wo), np.float32)      # horizontal pass: (H,W) @ Bh -> (H,Wo)
    for c in range(Wo):
        bh[c:c + K, c] = taps
    bv = np.zeros((Ho, H), np.float32)      # vertical pass: Bv @ (H,Wo) -> (Ho,Wo)
    for r in range(Ho):
        bv[r, r:r + K] = taps
    return bh, bv


def _ssim_plane_kernel(consts_ref, bh_ref, bv_ref, x_ref, y_ref, out_ref,
                       *, H, W, K):
    """One grid step = one (H, W) image plane -> scalar partial SSIM sum."""
    Ho = H - K + 1
    C1 = consts_ref[0]
    C2 = consts_ref[1]

    x = x_ref[0]            # (H, W) f32
    y = y_ref[0]
    bh = bh_ref[...]        # (W, Wo)
    bv = bv_ref[...]        # (Ho, H)

    # Stack the five statistics along the sublane axis -> one horizontal
    # matmul on the MXU instead of 5x11 shifted-slice MACs on the VALU.
    stack = jnp.concatenate([x, y, x * x, y * y, x * y], axis=0)   # (5H, W)
    hs = jnp.dot(stack, bh,
                 preferred_element_type=jnp.float32,
                 precision=lax.Precision.HIGHEST)                  # (5H, Wo)

    convs = []
    for s in range(5):      # vertical pass, one small matmul per statistic
        blk = hs[s * H:(s + 1) * H, :]                             # (H, Wo)
        convs.append(jnp.dot(bv, blk,
                             preferred_element_type=jnp.float32,
                             precision=lax.Precision.HIGHEST))     # (Ho, Wo)
    mu1, mu2, e11, e22, e12 = convs

    mu1_sq = mu1 * mu1
    mu2_sq = mu2 * mu2
    mu1_mu2 = mu1 * mu2
    sigma1_sq = e11 - mu1_sq
    sigma2_sq = e22 - mu2_sq
    sigma12 = e12 - mu1_mu2

    v1 = 2.0 * sigma12 + C2
    v2 = sigma1_sq + sigma2_sq + C2
    num = (2.0 * mu1_mu2 + C1) * v1
    den = (mu1_sq + mu2_sq + C1) * v2

    if hasattr(pl, "reciprocal"):
        # approx reciprocal on the EUP slot + one Newton step (~f32 accurate).
        r = pl.reciprocal(den, approx=True)
        r = r * (2.0 - den * r)
        ssim_map = num * r
    else:  # pragma: no cover - older jax fallback
        ssim_map = num / den

    # One cross-lane reduction per plane (cheap relative to the matmuls).
    out_ref[...] = jnp.reshape(jnp.sum(ssim_map), (1, 1, 1))


def l_ssim_pallas(img1, img2, window_size=11, size_average=True, val_range=None):
    # Channel fix-up from L_SSIM.forward (replicate single-channel img1).
    if img1.shape[1] != img2.shape[1] and img1.shape[1] == 1:
        img1 = jnp.concatenate([img1, img1, img1], axis=1)
    assert img1.shape == img2.shape, (img1.shape, img2.shape)
    N, C, H, W = img1.shape
    K = window_size
    assert H >= K and W >= K, "image must be at least window_size in H and W"
    Ho, Wo = H - K + 1, W - K + 1

    img1 = img1.astype(jnp.float32)
    img2 = img2.astype(jnp.float32)

    # Dynamic range L -> C1, C2 (data dependent, exactly like the PyTorch ref).
    if val_range is None:
        max_val = jnp.where(jnp.max(img1) > 128.0, 255.0, 1.0)
        min_val = jnp.where(jnp.min(img1) < -0.5, -1.0, 0.0)
        L = max_val - min_val
    else:
        L = jnp.asarray(val_range, jnp.float32)
    consts = jnp.stack([(0.01 * L) ** 2, (0.03 * L) ** 2]).astype(jnp.float32)

    G = N * C
    x = img1.reshape(G, H, W)
    y = img2.reshape(G, H, W)

    taps = _gaussian_taps(K, 1.5)
    bh_np, bv_np = _banded_matrices(taps, H, W, K)
    bh = jnp.asarray(bh_np)
    bv = jnp.asarray(bv_np)

    kernel = functools.partial(_ssim_plane_kernel, H=H, W=W, K=K)

    img_spec = pl.BlockSpec((1, H, W), lambda i: (i, 0, 0))
    bh_spec = pl.BlockSpec((W, Wo), lambda i: (0, 0))    # resident (const index)
    bv_spec = pl.BlockSpec((Ho, H), lambda i: (0, 0))

    # Cost estimate (matmul-dominated now).
    flops_per_plane = 2 * 5 * H * W * Wo + 2 * 5 * Ho * H * Wo + 25 * Ho * Wo
    cost = pl.CostEstimate(
        flops=int(G * flops_per_plane),
        transcendentals=int(G * Ho * Wo),
        bytes_accessed=int(4 * (2 * G * H * W + W * Wo + Ho * H + G + 2)))

    # Per-step VMEM working set (bytes): double-buffered x/y, banded matrices,
    # stacked operand, horizontal-pass result, conv outputs + elementwise temps.
    est = 4 * (4 * H * W
               + 2 * (W * Wo + Ho * H)
               + 5 * H * W + 5 * H * Wo
               + 14 * Ho * Wo)
    vmem_limit = int(min(64 * 2 ** 20, max(32 * 2 ** 20, 2 * est)))
    # TODO(synk): H-tile + (K-1)-row halo grid axis for very large planes so
    # this stays well under v7x's 64 MiB physical VMEM.

    partials = pl.pallas_call(
        kernel,
        out_shape=jax.ShapeDtypeStruct((G, 1, 1), jnp.float32),
        grid_spec=pltpu.PrefetchScalarGridSpec(
            num_scalar_prefetch=0,
            grid=(G,),
            in_specs=[
                pl.BlockSpec(memory_space=pltpu.MemorySpace.SMEM),  # [C1, C2]
                bh_spec,
                bv_spec,
                img_spec,
                img_spec,
            ],
            out_specs=pl.BlockSpec((1, 1, 1), lambda i: (i, 0, 0)),
        ),
        compiler_params=pltpu.CompilerParams(
            dimension_semantics=("parallel",),
            vmem_limit_bytes=vmem_limit),
        cost_estimate=cost,
    )(consts, bh, bv, x, y)

    if size_average:
        return 1.0 - jnp.sum(partials) / float(G * Ho * Wo)
    per_sample = jnp.sum(partials.reshape(N, C), axis=1) / float(C * Ho * Wo)
    return 1.0 - per_sample


def l_ssim_ref(img1, img2, window_size=11, size_average=True, val_range=None):
    """Pure-JAX reference reproducing the PyTorch L_SSIM forward."""
    if img1.shape[1] != img2.shape[1] and img1.shape[1] == 1:
        img1 = jnp.concatenate([img1, img1, img1], axis=1)
    N, C, H, W = img1.shape
    img1 = img1.astype(jnp.float32)
    img2 = img2.astype(jnp.float32)

    if val_range is None:
        max_val = jnp.where(jnp.max(img1) > 128.0, 255.0, 1.0)
        min_val = jnp.where(jnp.min(img1) < -0.5, -1.0, 0.0)
        L = max_val - min_val
    else:
        L = jnp.asarray(val_range, jnp.float32)

    g = jnp.asarray(_gaussian_taps(window_size, 1.5))
    w2 = jnp.outer(g, g)
    window = jnp.broadcast_to(w2, (C, 1, window_size, window_size))

    def conv(p):
        return lax.conv_general_dilated(
            p, window, (1, 1), "VALID",
            dimension_numbers=("NCHW", "OIHW", "NCHW"),
            feature_group_count=C,
            precision=lax.Precision.HIGHEST)

    mu1 = conv(img1)
    mu2 = conv(img2)
    mu1_sq = mu1 * mu1
    mu2_sq = mu2 * mu2
    mu1_mu2 = mu1 * mu2
    sigma1_sq = conv(img1 * img1) - mu1_sq
    sigma2_sq = conv(img2 * img2) - mu2_sq
    sigma12 = conv(img1 * img2) - mu1_mu2

    C1 = (0.01 * L) ** 2
    C2 = (0.03 * L) ** 2
    v1 = 2.0 * sigma12 + C2
    v2 = sigma1_sq + sigma2_sq + C2
    ssim_map = (2.0 * mu1_mu2 + C1) * v1 / ((mu1_sq + mu2_sq + C1) * v2)

    if size_average:
        ret = jnp.mean(ssim_map)
    else:
        ret = jnp.mean(ssim_map, axis=(1, 2, 3))
    return 1.0 - ret


if __name__ == "__main__":
    key = jax.random.PRNGKey(0)
    k1, k2 = jax.random.split(key)
    shape = (2, 1, 16, 16)  # N, C=1, H, W  (H, W >= window_size=11)
    img1 = jax.random.uniform(k1, shape, dtype=jnp.float32)
    img2 = jax.random.uniform(k2, shape, dtype=jnp.float32)

    loss = jax.block_until_ready(l_ssim_pallas(img1, img2))
    loss_ref = jax.block_until_ready(l_ssim_ref(img1, img2))

    assert jnp.allclose(loss, loss_ref, rtol=1e-4, atol=1e-4), (loss, loss_ref)
    print("KERNEL_OK")
</pallas_src>

<mosaic_0001>
module attributes {stable_mosaic.version = 11 : i64} {
  func.func @_ssim_plane_kernel(%arg0: i32, %arg1: memref<2xf32, #tpu.memory_space<smem>>, %arg2: memref<16x6xf32, #tpu.memory_space<vmem>>, %arg3: memref<6x16xf32, #tpu.memory_space<vmem>>, %arg4: memref<1x16x16xf32, #tpu.memory_space<vmem>>, %arg5: memref<1x16x16xf32, #tpu.memory_space<vmem>>, %arg6: memref<1x1x1xf32, #tpu.memory_space<vmem>>) attributes {dimension_semantics = [#tpu.dimension_semantics<parallel>], iteration_bounds = array<i64: 2>, scalar_prefetch = 0 : i64, scratch_operands = 0 : i64, tpu.core_type = #tpu.core_type<tc>, window_params = [{transform_indices = @transform_0, window_bounds = array<i64: 2>}, {pipeline_mode = #tpu.pipeline_mode<synchronous>, transform_indices = @transform_1, window_bounds = array<i64: 16, 6>}, {pipeline_mode = #tpu.pipeline_mode<synchronous>, transform_indices = @transform_2, window_bounds = array<i64: 6, 16>}, {transform_indices = @transform_3, window_bounds = array<i64: 1, 16, 16>}, {transform_indices = @transform_4, window_bounds = array<i64: 1, 16, 16>}, {transform_indices = @transform_5, window_bounds = array<i64: 1, 1, 1>}]} {
    %c0 = arith.constant 0 : index
    %0 = memref.load %arg1[%c0] : memref<2xf32, #tpu.memory_space<smem>>
    %c1 = arith.constant 1 : index
    %1 = memref.load %arg1[%c1] : memref<2xf32, #tpu.memory_space<smem>>
    %c0_0 = arith.constant 0 : index
    %c0_1 = arith.constant 0 : index
    %c0_2 = arith.constant 0 : index
    %2 = vector.load %arg4[%c0_0, %c0_1, %c0_2] : memref<1x16x16xf32, #tpu.memory_space<vmem>>, vector<1x16x16xf32>
    %3 = vector.shape_cast %2 : vector<1x16x16xf32> to vector<16x16xf32>
    %c0_3 = arith.constant 0 : index
    %c0_4 = arith.constant 0 : index
    %c0_5 = arith.constant 0 : index
    %4 = vector.load %arg5[%c0_3, %c0_4, %c0_5] : memref<1x16x16xf32, #tpu.memory_space<vmem>>, vector<1x16x16xf32>
    %5 = vector.shape_cast %4 : vector<1x16x16xf32> to vector<16x16xf32>
    %c0_6 = arith.constant 0 : index
    %c0_7 = arith.constant 0 : index
    %6 = vector.load %arg2[%c0_6, %c0_7] : memref<16x6xf32, #tpu.memory_space<vmem>>, vector<16x6xf32>
    %c0_8 = arith.constant 0 : index
    %c0_9 = arith.constant 0 : index
    %7 = vector.load %arg3[%c0_8, %c0_9] : memref<6x16xf32, #tpu.memory_space<vmem>>, vector<6x16xf32>
    %8 = arith.mulf %3, %3 : vector<16x16xf32>
    %9 = arith.mulf %5, %5 : vector<16x16xf32>
    %10 = arith.mulf %3, %5 : vector<16x16xf32>
    %11 = tpu.concatenate %3, %5, %8, %9, %10 in 0 : vector<16x16xf32>, vector<16x16xf32>, vector<16x16xf32>, vector<16x16xf32>, vector<16x16xf32> -> vector<80x16xf32>
    %cst = arith.constant dense<0.000000e+00> : vector<80x6xf32>
    %12 = tpu.matmul %11, %6, %cst {dimension_numbers = #tpu.dot_dimension_numbers<[1], [0], [0], [1], [0, 0, 1, 1], [], []>, precision = #tpu.contract_precision<fp32>} : vector<80x16xf32>, vector<16x6xf32>, vector<80x6xf32> -> vector<80x6xf32>
    %13 = vector.extract_strided_slice %12 {offsets = [0, 0], sizes = [16, 6], strides = [1, 1]} : vector<80x6xf32> to vector<16x6xf32>
    %cst_10 = arith.constant dense<0.000000e+00> : vector<6x6xf32>
    %14 = tpu.matmul %7, %13, %cst_10 {dimension_numbers = #tpu.dot_dimension_numbers<[1], [0], [0], [1], [0, 0, 1, 1], [], []>, precision = #tpu.contract_precision<fp32>} : vector<6x16xf32>, vector<16x6xf32>, vector<6x6xf32> -> vector<6x6xf32>
    %15 = vector.extract_strided_slice %12 {offsets = [16, 0], sizes = [16, 6], strides = [1, 1]} : vector<80x6xf32> to vector<16x6xf32>
    %cst_11 = arith.constant dense<0.000000e+00> : vector<6x6xf32>
    %16 = tpu.matmul %7, %15, %cst_11 {dimension_numbers = #tpu.dot_dimension_numbers<[1], [0], [0], [1], [0, 0, 1, 1], [], []>, precision = #tpu.contract_precision<fp32>} : vector<6x16xf32>, vector<16x6xf32>, vector<6x6xf32> -> vector<6x6xf32>
    %17 = vector.extract_strided_slice %12 {offsets = [32, 0], sizes = [16, 6], strides = [1, 1]} : vector<80x6xf32> to vector<16x6xf32>
    %cst_12 = arith.constant dense<0.000000e+00> : vector<6x6xf32>
    %18 = tpu.matmul %7, %17, %cst_12 {dimension_numbers = #tpu.dot_dimension_numbers<[1], [0], [0], [1], [0, 0, 1, 1], [], []>, precision = #tpu.contract_precision<fp32>} : vector<6x16xf32>, vector<16x6xf32>, vector<6x6xf32> -> vector<6x6xf32>
    %19 = vector.extract_strided_slice %12 {offsets = [48, 0], sizes = [16, 6], strides = [1, 1]} : vector<80x6xf32> to vector<16x6xf32>
    %cst_13 = arith.constant dense<0.000000e+00> : vector<6x6xf32>
    %20 = tpu.matmul %7, %19, %cst_13 {dimension_numbers = #tpu.dot_dimension_numbers<[1], [0], [0], [1], [0, 0, 1, 1], [], []>, precision = #tpu.contract_precision<fp32>} : vector<6x16xf32>, vector<16x6xf32>, vector<6x6xf32> -> vector<6x6xf32>
    %21 = vector.extract_strided_slice %12 {offsets = [64, 0], sizes = [16, 6], strides = [1, 1]} : vector<80x6xf32> to vector<16x6xf32>
    %cst_14 = arith.constant dense<0.000000e+00> : vector<6x6xf32>
    %22 = tpu.matmul %7, %21, %cst_14 {dimension_numbers = #tpu.dot_dimension_numbers<[1], [0], [0], [1], [0, 0, 1, 1], [], []>, precision = #tpu.contract_precision<fp32>} : vector<6x16xf32>, vector<16x6xf32>, vector<6x6xf32> -> vector<6x6xf32>
    %23 = arith.mulf %14, %14 : vector<6x6xf32>
    %24 = arith.mulf %16, %16 : vector<6x6xf32>
    %25 = arith.mulf %14, %16 : vector<6x6xf32>
    %26 = arith.subf %18, %23 : vector<6x6xf32>
    %27 = arith.subf %20, %24 : vector<6x6xf32>
    %28 = arith.subf %22, %25 : vector<6x6xf32>
    %cst_15 = arith.constant 2.000000e+00 : f32
    %29 = vector.broadcast %cst_15 : f32 to vector<6x6xf32>
    %30 = arith.mulf %29, %28 : vector<6x6xf32>
    %31 = vector.broadcast %1 : f32 to vector<6x6xf32>
    %32 = arith.addf %30, %31 : vector<6x6xf32>
    %33 = arith.addf %26, %27 : vector<6x6xf32>
    %34 = vector.broadcast %1 : f32 to vector<6x6xf32>
    %35 = arith.addf %33, %34 : vector<6x6xf32>
    %cst_16 = arith.constant 2.000000e+00 : f32
    %36 = vector.broadcast %cst_16 : f32 to vector<6x6xf32>
    %37 = arith.mulf %36, %25 : vector<6x6xf32>
    %38 = vector.broadcast %0 : f32 to vector<6x6xf32>
    %39 = arith.addf %37, %38 : vector<6x6xf32>
    %40 = arith.mulf %39, %32 : vector<6x6xf32>
    %41 = arith.addf %23, %24 : vector<6x6xf32>
    %42 = vector.broadcast %0 : f32 to vector<6x6xf32>
    %43 = arith.addf %41, %42 : vector<6x6xf32>
    %44 = arith.mulf %43, %35 : vector<6x6xf32>
    %45 = tpu.reciprocal %44 {approx = true} : vector<6x6xf32> -> vector<6x6xf32>
    %46 = arith.mulf %44, %45 : vector<6x6xf32>
    %cst_17 = arith.constant 2.000000e+00 : f32
    %47 = vector.broadcast %cst_17 : f32 to vector<6x6xf32>
    %48 = arith.subf %47, %46 : vector<6x6xf32>
    %49 = arith.mulf %45, %48 : vector<6x6xf32>
    %50 = arith.mulf %40, %49 : vector<6x6xf32>
    %51 = vector.shape_cast %50 : vector<6x6xf32> to vector<1x6x6xf32>
    %cst_18 = arith.constant dense<0.000000e+00> : vector<1xf32>
    %52 = vector.multi_reduction <add>, %51, %cst_18 [1, 2] : vector<1x6x6xf32> to vector<1xf32>
    %53 = vector.shape_cast %52 : vector<1xf32> to vector<1x1x1xf32>
    %54 = vector.extract %53[0, 0, 0] : f32 from vector<1x1x1xf32>
    %55 = vector.broadcast %54 : f32 to vector<1x1x1xf32>
    %c0_19 = arith.constant 0 : index
    %c0_20 = arith.constant 0 : index
    %c0_21 = arith.constant 0 : index
    %56 = vector.load %arg6[%c0_19, %c0_20, %c0_21] : memref<1x1x1xf32, #tpu.memory_space<vmem>>, vector<1x1x1xf32>
    tpu.vector_store %arg6[%c0_19, %c0_20, %c0_21], %55 {strides = array<i32>} : memref<1x1x1xf32, #tpu.memory_space<vmem>>, vector<1x1x1xf32>,
    return
  }
  func.func @transform_0(%arg0: i32) -> i32 {
    %c0_i32 = arith.constant 0 : i32
    %c0_i32_0 = arith.constant 0 : i32
    return %c0_i32 : i32
  }
  func.func @transform_1(%arg0: i32) -> (i32, i32) {
    %c0_i32 = arith.constant 0 : i32
    %c0_i32_0 = arith.constant 0 : i32
    %c0_i32_1 = arith.constant 0 : i32
    return %c0_i32, %c0_i32_0 : i32, i32
  }
  func.func @transform_2(%arg0: i32) -> (i32, i32) {
    %c0_i32 = arith.constant 0 : i32
    %c0_i32_0 = arith.constant 0 : i32
    %c0_i32_1 = arith.constant 0 : i32
    return %c0_i32, %c0_i32_0 : i32, i32
  }
  func.func @transform_3(%arg0: i32) -> (i32, i32, i32) {
    %c0_i32 = arith.constant 0 : i32
    %c0_i32_0 = arith.constant 0 : i32
    %c0_i32_1 = arith.constant 0 : i32
    return %arg0, %c0_i32, %c0_i32_0 : i32, i32, i32
  }
  func.func @transform_4(%arg0: i32) -> (i32, i32, i32) {
    %c0_i32 = arith.constant 0 : i32
    %c0_i32_0 = arith.constant 0 : i32
    %c0_i32_1 = arith.constant 0 : i32
    return %arg0, %c0_i32, %c0_i32_0 : i32, i32, i32
  }
  func.func @transform_5(%arg0: i32) -> (i32, i32, i32) {
    %c0_i32 = arith.constant 0 : i32
    %c0_i32_0 = arith.constant 0 : i32
    %c0_i32_1 = arith.constant 0 : i32
    return %arg0, %c0_i32, %c0_i32_0 : i32, i32, i32
  }
}

</mosaic_0001>

<bundles_post_ra>
// kernel: tpu_custom_call.1
= control target key start
LH: loop header
LB: loop body
LE: loop exit
PB: predicated region body
PF: predicated region fallthrough
CT: control target
= control target key end

     0   :  { %10 = vsyncpa [#allocation4], 0  ;;  %s5159_s0 = inlined_call_operand.vmem [shape: f32[2], index: 0, kind: input, shape index: {}]   ;;  %s5160_s1 = inlined_call_operand.vmem [shape: f32[16,6], index: 1, kind: input, shape index: {}]   ;;  %s5161_s2 = inlined_call_operand.hbm [shape: f32[6,16], index: 2, kind: input, shape index: {}]   ;;  %s5162_s3 = inlined_call_operand.vmem [shape: f32[2,16,16], index: 3, kind: input, shape index: {}]   ;;  %s5163_s4 = inlined_call_operand.hbm [shape: f32[2,16,16], index: 4, kind: input, shape index: {}]   ;;  %s5164_s5 = inlined_call_operand.vmem [shape: f32[2,1,1], index: 5, kind: output, shape index: {}]  }
   0x1   :  { %11 = vsyncpa [#allocation3], 0 }
   0x2   :  { %12 = vsyncpa [#allocation7], 0 }
   0x3   :  { %14 = vsyncpa [#allocation7 + $0x1], 0  ;;  %s4553_s18 = smov 0   ;;  %s4555_s19 = smov 0  }
   0x4   :  { %s4557_s20 = smov 0   ;;  %s4559_s21 = smov 0  }
   0x5 LB: > { %s4572_s22 = sadd.s32 4294967295, %s4513_s21   ;;  %s4575_s23 = sadd.s32 1, %s4513_s21   ;;  %s4513_s21 = sphi %s4559_s21, %s5180_s21   ;;  %s4509_s20 = sphi %s4557_s20, %s5179_s20   ;;  %s4505_s19 = sphi %s4555_s19, %s5178_s19   ;;  %s4501_s18 = sphi %s4553_s18, %s5177_s18  }
   0x6   : > { %s113_s24 = ssub.s32 %s4513_s21, %s4575_s23  ;;  %s116_s25 = sadd.s32 1, %s4509_s20 }
   0x7   : > { %p114_p0 = scmp.eq.s32.totalorder %s113_s24, 0  ;;  %p123_p1 = scmp.ne.s32.totalorder %s4509_s20, %s4505_s19 }
   0x8   : > { %p124_p2 = scmp.eq.s32.totalorder %s4513_s21, 0  ;;  %p129_p3 = scmp.ne.s32.totalorder %s4505_s19, %s4501_s18 }
   0x9   : > { %s4585_s26 = scalar_select %p114_p0, %s4509_s20, %s116_s25  }
   0xa   : > { %p4587_p4 = por %p124_p2, %p123_p1  ;;  %p5165_p5 = scmp.eq.s32.totalorder %s4572_s22, 0 }
   0xb   : > { %p3611_p6 = scmp.ge.s32.totalorder %s4513_s21, 1  ;;  %p166_p7 = scmp.lt.s32.totalorder %s4513_s21, 3 }
   0xc   : > { %p4596_p8 = por %p5165_p5, %p129_p3  ;;  %s179_s7 = sshll.u32 %s5159_s0, 4  ;;  %s180_s7 = int_to_ptr.vmem [resolvable:$true] %s179_s7 }
   0xd   : > { %p4600_p9 = pnand %p3611_p6, %p166_p7  ;;  %p4354_p11 = scmp.lt.s32.totalorder %s4513_s21, 2 }
   0xe   : > { %s5168_s28 = scalar_select %p4596_p8, 1, 0 }
   0xf   : > { %p4341_p10 = pneg %p4600_p9  ;;  %s4515_s9 = smov [#allocation5]  }
  0x10   : > { %s193_s10 = sshll.u32 %s4515_s9, 4  ;;  %p4618_p13 = pnand %p4354_p11, %p4587_p4  ;;  %s4622_s10 = int_to_ptr.vmem [resolvable:$true] %s193_s10 }
  0x11   : > { %p4612_p12 = pnand %p4341_p10, %p5165_p5  ;;  %s212_s12 = sand.u32 1, %s4509_s20  }
  0x12   : > { %s4398_s13 = scalar_lea.vmem %s180_s7, 16  ;;  %p4406_p6 = scmp.lt.s32.totalorder %s180_s7, %s180_s7 }
  0x13   : > { %p4399_p0 = scmp.ne.s32.totalorder %s180_s7, %s4398_s13  ;;  %p4400_p1 = pneg %p4612_p12 }
  0x14   : > { %p4407_p7 = scmp.lt.s32.totalorder %s4398_s13, %s4398_s13 }
  0x15   : > { %p4401_p2 = pnand %p4400_p1, %p4399_p0 }
  0x16   : > { %p4408_p10 = por %p4407_p7, %p4406_p6 }
  0x17   : > { %p4402_p3 = pneg %p4401_p2 }
  0x19   : > { %p4409_p5 = pnand %p4408_p10, %p4402_p3 }
  0x1b   : > { %4412 = shalt.err (!%p4409_p5)
}
  0x1c   : > { %s4516_s14 = smov [#allocation2]   ;;  %s4413_s17 = scalar_lea.hbm %s5161_s2, 128 }
  0x1d   : > { %4344 = dma.vmem_to_smem (!%p4612_p12), %s180_s7, 16, %s4516_s14, [#allocation4]  }
  0x1e   : > { %p4414_p4 = scmp.ne.s32.totalorder %s5161_s2, %s4413_s17  ;;  %p4420_p5 = scmp.lt.u32.totalorder %s4413_s17, %s5161_s2 }
  0x20   : > { %p4416_p11 = pnand %p4414_p4, %p4400_p1 }
  0x22   : > { %p4417_p0 = pneg %p4416_p11 }
  0x24   : > { %p4422_p2 = pnand %p4420_p5, %p4417_p0 }
  0x26   : > { %4425 = shalt.err (!%p4422_p2)
}
  0x27   : > { %s4426_s30 = scalar_lea.vmem %s4622_s10, 128  ;;  %p4434_p10 = scmp.lt.s32.totalorder %s4622_s10, %s4622_s10 }
  0x28   : > { %p4427_p3 = scmp.ne.s32.totalorder %s4622_s10, %s4426_s30  ;;  %p4435_p4 = scmp.lt.s32.totalorder %s4426_s30, %s4426_s30 }
  0x2a   : > { %p4429_p6 = pnand %p4427_p3, %p4400_p1  ;;  %p4436_p11 = por %p4435_p4, %p4434_p10 }
  0x2c   : > { %p4430_p7 = pneg %p4429_p6 }
  0x2e   : > { %p4437_p8 = pnand %p4436_p11, %p4430_p7 }
  0x30   : > { %4440 = shalt.err (!%p4437_p8)
}
  0x31   : > { %4347 = dma.hbm_to_vmem [thread:$0]  (!%p4612_p12), %s5161_s2, 128, %s4622_s10, [#allocation3]  }
  0x32   : > { %s3615_s9 = sshll.u32 %s212_s12, 4  ;;  %s3627_s13 = sshll.u32 %s4513_s21, 8 }
  0x33   : > { %s4663_s16 = scalar_lea.hbm %s5163_s4, %s3627_s13  ;;  %s216_s8 = scalar_lea.vmem [#allocation6], %s3615_s9 }
  0x34   : > { %s223_s17 = sshll.u32 %s216_s8, 4  ;;  %s4669_s18 = scalar_lea.sflag [#allocation7], %s212_s12  ;;  %s4665_s17 = int_to_ptr.vmem [resolvable:$true] %s223_s17 }
  0x35   : > { %s4441_s10 = scalar_lea.hbm %s4663_s16, 256  ;;  %p4443_p12 = pneg %p4618_p13 }
  0x36   : > { %p4442_p8 = scmp.ne.s32.totalorder %s4663_s16, %s4441_s10  ;;  %s4446_s25 = scalar_lea.hbm %s5163_s4, 512 }
  0x37   : > { %p4447_p5 = scmp.lt.u32.totalorder %s4663_s16, %s5163_s4  ;;  %p4448_p2 = scmp.lt.u32.totalorder %s4446_s25, %s4441_s10 }
  0x38   : > { %p4444_p1 = pnand %p4443_p12, %p4442_p8  ;;  %p4450_p6 = scmp.lt.u32.totalorder %s4441_s10, %s4663_s16 }
  0x39   : > { %p4449_p3 = por %p4448_p2, %p4447_p5 }
  0x3a   : > { %p4445_p0 = pneg %p4444_p1 }
  0x3b   : > { %p4451_p7 = por %p4450_p6, %p4449_p3 }
  0x3d   : > { %p4452_p10 = pnand %p4451_p7, %p4445_p0 }
  0x3f   : > { %4455 = shalt.err (!%p4452_p10)
}
  0x40   : > { %s4456_s12 = scalar_lea.vmem %s4665_s17, 256  ;;  %s4517_s6 = smov [#allocation6]  }
  0x41   : > { %p4457_p4 = scmp.ne.s32.totalorder %s4665_s17, %s4456_s12  ;;  %s4461_s7 = sshll.u32 %s4517_s6, 4  ;;  %s4462_s7 = int_to_ptr.vmem [resolvable:$false] %s4461_s7 }
  0x42   : > { %s4463_s9 = scalar_lea.vmem %s4462_s7, 512  ;;  %p4464_p1 = scmp.lt.s32.totalorder %s4665_s17, %s4462_s7 }
  0x43   : > { %p4459_p11 = pnand %p4457_p4, %p4443_p12  ;;  %p4465_p5 = scmp.lt.s32.totalorder %s4463_s9, %s4456_s12 }
  0x45   : > { %p4460_p8 = pneg %p4459_p11  ;;  %p4466_p2 = por %p4465_p5, %p4464_p1 }
  0x47   : > { %p4467_p3 = pnand %p4466_p2, %p4460_p8 }
  0x49   : > { %4470 = shalt.err (!%p4467_p3)
}
  0x4a   : > { %s4518_s13 = smov 128   ;;  %s4519_s14 = smov 8  }
  0x4b   : > { %4351 = dma.hbm_to_vmem [thread:$0]  (!%p4618_p13), %s4663_s16, 256, %s4665_s17, %s4669_s18, %s4518_s13, %s4518_s13, %s4519_s14  }
  0x4c   : > { %235 = sbr.rel (%p4600_p9) target bundleno = 1077 (0x435), region = 40  ;;  %p5172_p12 = scmp.eq.s32.totalorder (!%p4600_p9), %s4572_s22, 0 }
  0x53   : > { %4488 = dma.done.wait (%p5172_p12), [#allocation4], 16   ;;  %p5173_p0 = pmov %p5172_p12 }
  0x55   : > { %4490 = vsyncadd (%p5173_p0), [#allocation4], 4294967280  ;;  %p5174_p6 = pmov %p5173_p0 }
  0x56   : > { %p5175_p7 = pmov %p5173_p0 }
  0x57   : > { %4492 = dma.done.wait (%p5174_p6), [#allocation3], 128  }
  0x58   : > { %4494 = vsyncadd (%p5175_p7), [#allocation3], 4294967168  ;;  %s245_s15 = sand.u32 1, %s4505_s19   ;;  %p5176_p13 = scmp.ne.s32.totalorder %s5168_s28, 0 }
  0x59   : > { %s3621_s11 = sshll.u32 %s245_s15, 4  ;;  %s246_s16 = scalar_lea.sflag [#allocation7], %s245_s15 }
  0x5a   : > { %s249_s8 = scalar_lea.vmem [#allocation6], %s3621_s11 }
  0x5b   : > { %4496 = dma.done.wait (%p5176_p13), %s246_s16, 256  }
  0x5c   : > { %4498 = vsyncadd (%p5176_p13), %s246_s16, 4294967040 }
  0x5d   : > { %254 = sfence }
  0x5e   : > { %v294_v0 = vld [vmem:[%s5160_s1] sm:$0xff]  ;;  %v295_v1 = vld [vmem:[%s5160_s1 + $0x8] sm:$0xff]  ;;  %p280_p9 = scmp.lt.s32.totalorder %s4572_s22, 1  ;;  %vm303_vm0 = vcmask 130048   ;;  %vm4521_vm1 = vmmov 0   ;;  %s288_s27 = sld [smem:[#allocation2]] }
  0x5f   : > { %v292_v2 = vld [vmem:[%s249_s8] sm:$0xff]  ;;  %v335_v3 = vand.u32 4294901760, %v294_v0  ;;  %v338_v4 = vand.u32 4294901760, %v295_v1  ;;  %v4720_v6 = vld [vmem:[%s249_s8 + $0x8] sm:$0xff]  ;;  %s3624_s30 = sld [smem:[#allocation2 + $0x1]]  ;;  %vm3501_vm2 = vcmask 46080  }
  0x60   : > { %v311_v5 = vsel %vm303_vm0, %v292_v2, 0  ;;  %v299_v7 = vmul.f32 %v292_v2, %v292_v2  ;;  %s5182_s22 = smov (!%p280_p9, %s4572_s22), 1  ;;  %v314_v9 = vsel %vm303_vm0, %v4720_v6, 0  ;;  %v300_v10 = vmul.f32 %v4720_v6, %v4720_v6 }
  0x61   : > { %v4725_v8 = vand.u32 4294901760, %v311_v5  ;;  %v4731_v11 = vpack.c.bf16 %v338_v4, %v335_v3  ;;  %v4733_v12 = vand.u32 4294901760, %v314_v9  ;;  %v4735_v13 = vsub.f32 %v294_v0, %v335_v3  ;;  %s3628_s28 = sshll.u32 %s5182_s22, 4  ;;  %s287_s7 = scalar_lea.vmem %s5164_s5, %s5182_s22 }
  0x62   : > { %v4737_v14 = vsub.f32 %v295_v1, %v338_v4  ;;  %v323_v16 = vsel %vm303_vm0, %v299_v7, 0  ;;  %s284_s25 = scalar_lea.vmem %s5162_s3, %s3628_s28  ;;  %v326_v23 = vsel %vm303_vm0, %v300_v10, 0  ;;  %vm3513_vm3 = vcmask 0  }
  0x63   : > { %v4741_v15 = vsub.f32 %v311_v5, %v4725_v8  ;;  %4116 = vmatprep.subr.bf16.mxu0 %v4731_v11  ;;  %v4749_v17 = vsub.f32 %v314_v9, %v4733_v12  ;;  %v504_v18 = vand.u32 4294901760, %v4735_v13  ;;  %v290_v20 = vld [vmem:[%s284_s25] sm:$0xff]  ;;  %v291_v21 = vld [vmem:[%s284_s25 + $0x8] sm:$0xff]  ;;  %v4758_v27 = vand.u32 4294901760, %v323_v16 }
  0x64   : > { %v511_v19 = vand.u32 4294901760, %v4737_v14  ;;  %4118 = vmatpush3.bf16.msra.mxu0 %v4731_v11  ;;  %v297_v24 = vmul.f32 %v290_v20, %v290_v20  ;;  %v305_v25 = vsel %vm303_vm0, %v290_v20, 0  ;;  %v308_v26 = vsel %vm303_vm0, %v291_v21, 0 }
  0x65   : > { %v423_v22 = vand.u32 4294901760, %v4741_v15  ;;  %v4760_v28 = vand.u32 4294901760, %v305_v25  ;;  %v4762_v29 = vand.u32 4294901760, %v308_v26  ;;  %v433_v31 = vand.u32 4294901760, %v4749_v17 }
  0x66   : > { %v505_v32 = vsub.f32 %v4735_v13, %v504_v18  ;;  %v512_v33 = vsub.f32 %v4737_v14, %v511_v19  ;;  %v317_v34 = vsel %vm303_vm0, %v297_v24, 0  ;;  %v298_v35 = vmul.f32 %v291_v21, %v291_v21 }
  0x67   : > { %v424_v30 = vsub.f32 %v4741_v15, %v423_v22  ;;  %v301_v36 = vmul.f32 %v292_v2, %v290_v20  ;;  %v4776_v37 = vsub.f32 %v305_v25, %v4760_v28  ;;  %v4779_v38 = vsub.f32 %v308_v26, %v4762_v29 }
  0x68   : > { %v4781_v39 = vand.u32 4294901760, %v326_v23  ;;  %v506_v40 = vand.u32 4294901760, %v505_v32  ;;  %v513_v41 = vand.u32 4294901760, %v512_v33  ;;  %v4783_v42 = vand.u32 4294901760, %v317_v34 }
  0x69   : > { %v320_v43 = vsel %vm303_vm0, %v298_v35, 0  ;;  %v403_v44 = vand.u32 4294901760, %v4776_v37  ;;  %v413_v45 = vand.u32 4294901760, %v4779_v38  ;;  %v425_v46 = vand.u32 4294901760, %v424_v30 }
  0x6a   : > { %v4788_v47 = vand.u32 4294901760, %v320_v43  ;;  %v434_v48 = vsub.f32 %v4749_v17, %v433_v31  ;;  %v4119_v49 = vpack.c.bf16 %v513_v41, %v506_v40  ;;  %v4794_v50 = vsub.f32 %v317_v34, %v4783_v42 }
  0x6b   : > { %v4797_v51 = vsub.f32 %v323_v16, %v4758_v27  ;;  %v404_v52 = vsub.f32 %v4776_v37, %v403_v44  ;;  %v414_v53 = vsub.f32 %v4779_v38, %v413_v45  ;;  %v329_v55 = vsel %vm303_vm0, %v301_v36, 0 }
  0x6c   : > { %v4806_v54 = vsub.f32 %v320_v43, %v4788_v47  ;;  %4120 = vmatprep.subr.bf16.mxu0 %v4119_v49  ;;  %v443_v56 = vand.u32 4294901760, %v4794_v50  ;;  %v4812_v58 = vsub.f32 %v326_v23, %v4781_v39  ;;  %v4814_v59 = vand.u32 4294901760, %v329_v55 }
  0x6d   : > { %v463_v57 = vand.u32 4294901760, %v4797_v51  ;;  %v405_v60 = vand.u32 4294901760, %v404_v52  ;;  %v415_v61 = vand.u32 4294901760, %v414_v53  ;;  %v302_v63 = vmul.f32 %v4720_v6, %v291_v21 }
  0x6e   : > { %v453_v62 = vand.u32 4294901760, %v4806_v54  ;;  %v444_v0 = vsub.f32 %v4794_v50, %v443_v56  ;;  %v4822_v1 = vsub.f32 %v329_v55, %v4814_v59  ;;  %v4123_v2 = vpack.c.bf16 %v4737_v14, %v4735_v13 }
  0x6f   : > { %3795 = vmatprep.mubr.f32.mxu0 %v405_v60  ;;  %v332_v3 = vsel %vm303_vm0, %v302_v63, 0  ;;  %v435_v4 = vand.u32 4294901760, %v434_v48  ;;  %v473_v6 = vand.u32 4294901760, %v4812_v58  ;;  %v464_v9 = vsub.f32 %v4797_v51, %v463_v57 }
  0x70   : > { %3796 = vmatmul.mubr.f32.vlgmr.msra.gmra.mrb[0].mxu0 %v415_v61  ;;  %v454_v5 = vsub.f32 %v4806_v54, %v453_v62  ;;  %v445_v7 = vand.u32 4294901760, %v444_v0  ;;  %v483_v10 = vand.u32 4294901760, %v4822_v1  ;;  %v4835_v16 = vand.u32 4294901760, %v332_v3 }
  0x71   : > { %3798 = vmatprep.mubr.f32.mxu0 %v425_v46  ;;  %4122 = vmatpush3.bf16.msra.mxu0 %v4119_v49  ;;  %v474_v23 = vsub.f32 %v4812_v58, %v473_v6  ;;  %v465_v24 = vand.u32 4294901760, %v464_v9  ;;  %v4131_v35 = vpack.c.bf16 %v511_v19, %v504_v18  ;;  %v4522_v13 = vmov 0.0  }
  0x72   : > { %4124 = vmatprep.subr.bf16.mxu0 %v4123_v2  ;;  %v492_v20 = vsub.f32 %v332_v3, %v4835_v16  ;;  %v455_v21 = vand.u32 4294901760, %v454_v5  ;;  %v484_v25 = vsub.f32 %v4822_v1, %v483_v10  ;;  %3909 = vmatprep.mubr.msk.f32.mxu1 %vm4521_vm1, %v4522_v13 }
  0x73   : > { %v475_v30 = vand.u32 4294901760, %v474_v23 }
  0x74   : > { %3799 = vmatmul.mubr.f32.gmra.mrb[2].mxu0 %v435_v4  ;;  %v493_v26 = vand.u32 4294901760, %v492_v20  ;;  %v485_v33 = vand.u32 4294901760, %v484_v25 }
  0x75   : > { %3801 = vmatprep.mubr.f32.mxu0 %v445_v7 }
  0x76   : > { %v494_v32 = vsub.f32 %v492_v20, %v493_v26 }
  0x78   : > { %3802 = vmatmul.mubr.f32.gmra.mrb[4].mxu0 %v455_v21  ;;  %v495_v34 = vand.u32 4294901760, %v494_v32 }
  0x79   : > { %3804 = vmatprep.mubr.f32.mxu0 %v465_v24 }
  0x7c   : > { %3805 = vmatmul.mubr.f32.gmra.mrb[6].mxu0 %v475_v30 }
  0x7d   : > { %3807 = vmatprep.mubr.f32.mxu0 %v485_v33 }
  0x80   : > { %3808 = vmatmul.mubr.f32.gmra.mrb[8].mxu0 %v495_v34 }
  0x81   : > { %3814 = vmatprep.mubr.f32.mxu0 %v4760_v28 }
  0x84   : > { %3815 = vmatmul.mubr.f32.vlgmr.msra.gmra.mrb[0].mxu0 %v4762_v29 }
  0x85   : > { %3817 = vmatprep.mubr.f32.mxu0 %v4725_v8  ;;  %4126 = vmatpush3.bf16.msra.mxu0 %v4123_v2 }
  0x86   : > { %4128 = vmatprep.subr.bf16.mxu0 %v4731_v11 }
  0x88   : > { %3818 = vmatmul.mubr.f32.gmra.mrb[2].mxu0 %v4733_v12 }
  0x89   : > { %3820 = vmatprep.mubr.f32.mxu0 %v4783_v42 }
  0x8c   : > { %3821 = vmatmul.mubr.f32.gmra.mrb[4].mxu0 %v4788_v47 }
  0x8d   : > { %3823 = vmatprep.mubr.f32.mxu0 %v4758_v27 }
  0x90   : > { %3824 = vmatmul.mubr.f32.gmra.mrb[6].mxu0 %v4781_v39 }
  0x91   : > { %3826 = vmatprep.mubr.f32.mxu0 %v4814_v59 }
  0x94   : > { %3827 = vmatmul.mubr.f32.gmra.mrb[8].mxu0 %v4835_v16 }
  0x95   : > { %3833 = vmatprep.mubr.f32.mxu0 %v4776_v37 }
  0x98   : > { %3834 = vmatmul.mubr.f32.vlgmr.msra.gmra.mrb[0].mxu0 %v4779_v38 }
  0x99   : > { %3836 = vmatprep.mubr.f32.mxu0 %v4741_v15  ;;  %4130 = vmatpush3.bf16.msra.mxu0 %v4731_v11 }
  0x9a   : > { %4132 = vmatprep.subr.bf16.mxu0 %v4131_v35 }
  0x9c   : > { %3837 = vmatmul.mubr.f32.gmra.mrb[2].mxu0 %v4749_v17 }
  0x9d   : > { %3839 = vmatprep.mubr.f32.mxu0 %v4794_v50 }
  0xa0   : > { %3840 = vmatmul.mubr.f32.gmra.mrb[4].mxu0 %v4806_v54 }
  0xa1   : > { %3842 = vmatprep.mubr.f32.mxu0 %v4797_v51 }
  0xa4   : > { %3843 = vmatmul.mubr.f32.gmra.mrb[6].mxu0 %v4812_v58 }
  0xa5   : > { %3845 = vmatprep.mubr.f32.mxu0 %v4822_v1 }
  0xa8   : > { %3846 = vmatmul.mubr.f32.gmra.mrb[8].mxu0 %v492_v20 }
  0xa9   : > { %3852 = vmatprep.mubr.f32.mxu0 %v403_v44 }
  0xac   : > { %3853 = vmatmul.mubr.f32.vlgmr.msra.gmra.mrb[0].mxu0 %v413_v45 }
  0xad   : > { %3855 = vmatprep.mubr.f32.mxu0 %v423_v22  ;;  %4134 = vmatpush3.bf16.msra.mxu0 %v4131_v35 }
  0xae   : > { %4136 = vmatprep.subr.bf16.mxu0 %v4731_v11 }
  0xb0   : > { %3856 = vmatmul.mubr.f32.gmra.mrb[2].mxu0 %v433_v31 }
  0xb1   : > { %3858 = vmatprep.mubr.f32.mxu0 %v443_v56 }
  0xb4   : > { %3859 = vmatmul.mubr.f32.gmra.mrb[4].mxu0 %v453_v62 }
  0xb5   : > { %3861 = vmatprep.mubr.f32.mxu0 %v463_v57 }
  0xb8   : > { %3862 = vmatmul.mubr.f32.gmra.mrb[6].mxu0 %v473_v6 }
  0xb9   : > { %3864 = vmatprep.mubr.f32.mxu0 %v483_v10 }
  0xbc   : > { %3865 = vmatmul.mubr.f32.gmra.mrb[8].mxu0 %v493_v26 }
  0xbd   : > { %3871 = vmatprep.mubr.f32.mxu0 %v4760_v28 }
  0xc0   : > { %3872 = vmatmul.mubr.f32.vlgmr.msra.gmra.mrb[0].mxu0 %v4762_v29 }
  0xc1   : > { %3874 = vmatprep.mubr.f32.mxu0 %v4725_v8  ;;  %4138 = vmatpush3.bf16.msra.mxu0 %v4731_v11  ;;  %v4520_v11 = vmov 0.0|0.0  }
  0xc2   : > { %4139 = vmatprep.subr.bf16.mxu1 %v4520_v11 }
  0xc4   : > { %3875 = vmatmul.mubr.f32.gmra.mrb[2].mxu0 %v4733_v12 }
  0xc5   : > { %3877 = vmatprep.mubr.f32.mxu0 %v4783_v42 }
  0xc8   : > { %3878 = vmatmul.mubr.f32.gmra.mrb[4].mxu0 %v4788_v47 }
  0xc9   : > { %3880 = vmatprep.mubr.f32.mxu0 %v4758_v27 }
  0xcc   : > { %3881 = vmatmul.mubr.f32.gmra.mrb[6].mxu0 %v4781_v39 }
  0xcd   : > { %3883 = vmatprep.mubr.f32.mxu0 %v4814_v59 }
  0xd0   : > { %3884 = vmatmul.mubr.f32.gmra.mrb[8].mxu0 %v4835_v16 }
  0xd1   : > { %3890 = vmatprep.mubr.f32.mxu0 %v4760_v28 }
  0xd4   : > { %3891 = vmatmul.mubr.f32.vlgmr.msra.gmra.mrb[0].mxu0 %v4762_v29 }
  0xd5   : > { %3893 = vmatprep.mubr.f32.mxu0 %v4725_v8  ;;  %v296_v8 = vld [vmem:[#allocation5] sm:$0x3f] }
  0xd8   : > { %3894 = vmatmul.mubr.f32.gmra.mrb[2].mxu0 %v4733_v12  ;;  %v1181_v12 = vsel %vm303_vm0, %v296_v8, 0 }
  0xd9   : > { %3896 = vmatprep.mubr.f32.mxu0 %v4783_v42  ;;  %v4905_v14 = vand.u32 4294901760, %v1181_v12 }
  0xdb   : > { %v4908_v15 = vsub.f32 %v1181_v12, %v4905_v14 }
  0xdc   : > { %3897 = vmatmul.mubr.f32.gmra.mrb[4].mxu0 %v4788_v47 }
  0xdd   : > { %3899 = vmatprep.mubr.f32.mxu0 %v4758_v27  ;;  %v4911_v17 = vand.u32 4294901760, %v4908_v15 }
  0xdf   : > { %v1253_v27 = vsub.f32 %v4908_v15, %v4911_v17 }
  0xe0   : > { %3900 = vmatmul.mubr.f32.gmra.mrb[6].mxu0 %v4781_v39 }
  0xe1   : > { %3902 = vmatprep.mubr.f32.mxu0 %v4814_v59  ;;  %v4922_v41 = vand.u32 4294901760, %v1253_v27 }
  0xe4   : > { %3903 = vmatmul.mubr.f32.gmra.mrb[8].mxu0 %v4835_v16 }
 0x1a7   : > { %v3892_v18 = vpop.f32.mrb[0].mxu0 }
 0x1a8   : > { %v1187_v19 = vand.u32 4294901760, %v3892_v18  ;;  %v1122_v22 = vpop.f32.mrb[1].mxu0 }
 0x1a9   : > { %v1184_v28 = vand.u32 4294901760, %v1122_v22 }
 0x1aa   : > { %v4915_v29 = vsub.f32 %v3892_v18, %v1187_v19 }
 0x1ab   : > { %v4917_v31 = vpack.c.bf16 %v1187_v19, %v1184_v28  ;;  %v4919_v36 = vsub.f32 %v1122_v22, %v1184_v28  ;;  %v3895_v37 = vpop.f32.mrb[2].mxu0 }
 0x1ac   : > { %v1270_v38 = vand.u32 4294901760, %v4915_v29  ;;  %v1646_v39 = vand.u32 4294901760, %v3895_v37  ;;  %v1134_v40 = vpop.f32.mrb[3].mxu0 }
 0x1ad   : > { %v1263_v42 = vand.u32 4294901760, %v4919_v36  ;;  %v4146_v43 = vpack.c.bf16 %v4915_v29, %v4919_v36  ;;  %v1643_v44 = vand.u32 4294901760, %v1134_v40  ;;  %4141 = vmatpush3.bf16.msra.mxu1 %v4917_v31 }
 0x1ae   : > { %v1271_v45 = vsub.f32 %v4915_v29, %v1270_v38  ;;  %v4929_v46 = vsub.f32 %v3895_v37, %v1646_v39  ;;  %4142 = vmatprep.subr.bf16.mxu1 %v4520_v11 }
 0x1af   : > { %v1264_v47 = vsub.f32 %v4919_v36, %v1263_v42  ;;  %v4933_v48 = vpack.c.bf16 %v1646_v39, %v1643_v44  ;;  %v4935_v49 = vsub.f32 %v1134_v40, %v1643_v44  ;;  %v3898_v50 = vpop.f32.mrb[4].mxu0  ;;  %v4937_v51 = vpack.c.bf16 %v1270_v38, %v1263_v42 }
 0x1b0   : > { %v1272_v52 = vand.u32 4294901760, %v1271_v45  ;;  %v1729_v53 = vand.u32 4294901760, %v4929_v46  ;;  %v2105_v54 = vand.u32 4294901760, %v3898_v50  ;;  %v1146_v55 = vpop.f32.mrb[5].mxu0  ;;  %3910 = vmatmul.mubr.f32.vlgmr.msra.gmra.mrb[0].mxu1 %v4922_v41 }
 0x1b1   : > { %v1265_v56 = vand.u32 4294901760, %v1264_v47  ;;  %v1722_v57 = vand.u32 4294901760, %v4935_v49  ;;  %v4164_v58 = vpack.c.bf16 %v4929_v46, %v4935_v49  ;;  %v2102_v59 = vand.u32 4294901760, %v1146_v55  ;;  %3916 = vmatprep.mubr.msk.f32.mxu1 %vm4521_vm1, %v4522_v13 }
 0x1b2   : > { %v1730_v60 = vsub.f32 %v4929_v46, %v1729_v53  ;;  %v4947_v61 = vsub.f32 %v3898_v50, %v2105_v54 }
 0x1b3   : > { %v1723_v62 = vsub.f32 %v4935_v49, %v1722_v57  ;;  %v4950_v63 = vpack.c.bf16 %v2105_v54, %v2102_v59  ;;  %v4952_v0 = vsub.f32 %v1146_v55, %v2102_v59  ;;  %v3901_v1 = vpop.f32.mrb[6].mxu0  ;;  %v4143_v2 = vpack.c.bf16 %v1272_v52, %v1265_v56 }
 0x1b4   : > { %v1731_v3 = vand.u32 4294901760, %v1730_v60  ;;  %v2188_v4 = vand.u32 4294901760, %v4947_v61  ;;  %v2564_v5 = vand.u32 4294901760, %v3901_v1  ;;  %v1158_v6 = vpop.f32.mrb[7].mxu0  ;;  %v4955_v7 = vpack.c.bf16 %v1729_v53, %v1722_v57 }
 0x1b5   : > { %v1724_v9 = vand.u32 4294901760, %v1723_v62  ;;  %v2181_v10 = vand.u32 4294901760, %v4952_v0  ;;  %v4182_v16 = vpack.c.bf16 %v4947_v61, %v4952_v0  ;;  %v2561_v20 = vand.u32 4294901760, %v1158_v6  ;;  %4144 = vmatpush3.bf16.msra.mxu1 %v4143_v2 }
 0x1b6   : > { %v2189_v21 = vsub.f32 %v4947_v61, %v2188_v4  ;;  %v4961_v23 = vsub.f32 %v3901_v1, %v2564_v5  ;;  %4145 = vmatprep.subr.bf16.mxu1 %v4520_v11 }
 0x1b7   : > { %v2182_v24 = vsub.f32 %v4952_v0, %v2181_v10  ;;  %v4965_v25 = vpack.c.bf16 %v2564_v5, %v2561_v20  ;;  %v4967_v26 = vsub.f32 %v1158_v6, %v2561_v20  ;;  %v3904_v30 = vpop.f32.mrb[8].mxu0  ;;  %v4161_v32 = vpack.c.bf16 %v1731_v3, %v1724_v9 }
 0x1b8   : > { %v2190_v33 = vand.u32 4294901760, %v2189_v21  ;;  %v2647_v34 = vand.u32 4294901760, %v4961_v23  ;;  %v3023_v35 = vand.u32 4294901760, %v3904_v30  ;;  %v1170_v8 = vpop.f32.mrb[9].mxu0  ;;  %3917 = vmatmul.mubr.f32.vlgmr.msra.gmra.mrb[0].mxu1 %v4905_v14  ;;  %v4971_v12 = vpack.c.bf16 %v2188_v4, %v2181_v10 }
 0x1b9   : > { %v2183_v18 = vand.u32 4294901760, %v2182_v24  ;;  %v2640_v19 = vand.u32 4294901760, %v4967_v26  ;;  %v4200_v22 = vpack.c.bf16 %v4961_v23, %v4967_v26  ;;  %v3020_v27 = vand.u32 4294901760, %v1170_v8  ;;  %4147 = vmatpush3.bf16.msra.mxu1 %v4146_v43  ;;  %3923 = vmatprep.mubr.msk.f32.mxu1 %vm4521_vm1, %v4522_v13 }
 0x1ba   : > { %v2648_v28 = vsub.f32 %v4961_v23, %v2647_v34  ;;  %v4979_v29 = vsub.f32 %v3904_v30, %v3023_v35  ;;  %4148 = vmatprep.subr.bf16.mxu1 %v4520_v11 }
 0x1bb   : > { %v2641_v36 = vsub.f32 %v4967_v26, %v2640_v19  ;;  %v4983_v37 = vpack.c.bf16 %v3023_v35, %v3020_v27  ;;  %v4985_v38 = vsub.f32 %v1170_v8, %v3020_v27  ;;  %v4179_v39 = vpack.c.bf16 %v2190_v33, %v2183_v18 }
 0x1bc   : > { %v2649_v40 = vand.u32 4294901760, %v2648_v28  ;;  %v3106_v42 = vand.u32 4294901760, %v4979_v29  ;;  %v4988_v43 = vpack.c.bf16 %v2647_v34, %v2640_v19 }
 0x1bd   : > { %v2642_v44 = vand.u32 4294901760, %v2641_v36  ;;  %v3099_v45 = vand.u32 4294901760, %v4985_v38  ;;  %v4218_v47 = vpack.c.bf16 %v4979_v29, %v4985_v38 }
 0x1be   : > { %v3107_v50 = vsub.f32 %v4979_v29, %v3106_v42 }
 0x1bf   : > { %v3100_v52 = vsub.f32 %v4985_v38, %v3099_v45  ;;  %v4995_v53 = vpack.c.bf16 %v3106_v42, %v3099_v45  ;;  %v4997_v54 = vpack.c.bf16 %v2649_v40, %v2642_v44 }
 0x1c0   : > { %v3108_v55 = vand.u32 4294901760, %v3107_v50  ;;  %3924 = vmatmul.mubr.f32.vlgmr.msra.gmra.mrb[0].mxu1 %v4908_v15 }
 0x1c1   : > { %v3101_v56 = vand.u32 4294901760, %v3100_v52  ;;  %4150 = vmatpush3.bf16.msra.mxu1 %v4917_v31  ;;  %3930 = vmatprep.mubr.msk.f32.mxu1 %vm4521_vm1, %v4522_v13 }
 0x1c2   : > { %4151 = vmatprep.subr.bf16.mxu1 %v4520_v11 }
 0x1c3   : > { %v5004_v57 = vpack.c.bf16 %v3108_v55, %v3101_v56 }
 0x1c8   : > { %3931 = vmatmul.mubr.f32.vlgmr.msra.gmra.mrb[0].mxu1 %v4911_v17 }
 0x1c9   : > { %4153 = vmatpush3.bf16.msra.mxu1 %v4937_v51  ;;  %3937 = vmatprep.mubr.msk.f32.mxu1 %vm4521_vm1, %v4522_v13 }
 0x1ca   : > { %4154 = vmatprep.subr.bf16.mxu1 %v4520_v11 }
 0x1d0   : > { %3938 = vmatmul.mubr.f32.vlgmr.msra.gmra.mrb[0].mxu1 %v4905_v14 }
 0x1d1   : > { %4156 = vmatpush3.bf16.msra.mxu1 %v4917_v31  ;;  %3944 = vmatprep.mubr.msk.f32.mxu1 %vm4521_vm1, %v4522_v13 }
 0x1d2   : > { %4157 = vmatprep.subr.bf16.mxu1 %v4520_v11 }
 0x1d8   : > { %3945 = vmatmul.mubr.f32.vlgmr.msra.gmra.mrb[0].mxu1 %v4905_v14 }
 0x1d9   : > { %4159 = vmatpush3.bf16.msra.mxu1 %v4933_v48  ;;  %3951 = vmatprep.mubr.msk.f32.mxu1 %vm4521_vm1, %v4522_v13 }
 0x1da   : > { %4160 = vmatprep.subr.bf16.mxu1 %v4520_v11 }
 0x1dc   : > { %3952 = vmatmul.mubr.f32.vlgmr.msra.gmra.mrb[2].mxu1 %v4922_v41 }
 0x1dd   : > { %4162 = vmatpush3.bf16.msra.mxu1 %v4161_v32  ;;  %3958 = vmatprep.mubr.msk.f32.mxu1 %vm4521_vm1, %v4522_v13 }
 0x1de   : > { %4163 = vmatprep.subr.bf16.mxu1 %v4520_v11 }
 0x1e4   : > { %3959 = vmatmul.mubr.f32.vlgmr.msra.gmra.mrb[2].mxu1 %v4905_v14 }
 0x1e5   : > { %4165 = vmatpush3.bf16.msra.mxu1 %v4164_v58  ;;  %3965 = vmatprep.mubr.msk.f32.mxu1 %vm4521_vm1, %v4522_v13 }
 0x1e6   : > { %4166 = vmatprep.subr.bf16.mxu1 %v4520_v11 }
 0x1ec   : > { %3966 = vmatmul.mubr.f32.vlgmr.msra.gmra.mrb[2].mxu1 %v4908_v15 }
 0x1ed   : > { %4168 = vmatpush3.bf16.msra.mxu1 %v4933_v48  ;;  %3972 = vmatprep.mubr.msk.f32.mxu1 %vm4521_vm1, %v4522_v13 }
 0x1ee   : > { %4169 = vmatprep.subr.bf16.mxu1 %v4520_v11 }
 0x1f4   : > { %3973 = vmatmul.mubr.f32.vlgmr.msra.gmra.mrb[2].mxu1 %v4911_v17 }
 0x1f5   : > { %4171 = vmatpush3.bf16.msra.mxu1 %v4955_v7  ;;  %3979 = vmatprep.mubr.msk.f32.mxu1 %vm4521_vm1, %v4522_v13 }
 0x1f6   : > { %4172 = vmatprep.subr.bf16.mxu1 %v4520_v11 }
 0x1fc   : > { %3980 = vmatmul.mubr.f32.vlgmr.msra.gmra.mrb[2].mxu1 %v4905_v14 }
 0x1fd   : > { %4174 = vmatpush3.bf16.msra.mxu1 %v4933_v48  ;;  %3986 = vmatprep.mubr.msk.f32.mxu1 %vm4521_vm1, %v4522_v13 }
 0x1fe   : > { %4175 = vmatprep.subr.bf16.mxu1 %v4520_v11 }
 0x204   : > { %3987 = vmatmul.mubr.f32.vlgmr.msra.gmra.mrb[2].mxu1 %v4905_v14 }
 0x205   : > { %4177 = vmatpush3.bf16.msra.mxu1 %v4950_v63  ;;  %3993 = vmatprep.mubr.msk.f32.mxu1 %vm4521_vm1, %v4522_v13 }
 0x206   : > { %4178 = vmatprep.subr.bf16.mxu1 %v4520_v11 }
 0x208   : > { %3994 = vmatmul.mubr.f32.vlgmr.msra.gmra.mrb[4].mxu1 %v4922_v41 }
 0x209   : > { %4180 = vmatpush3.bf16.msra.mxu1 %v4179_v39  ;;  %4000 = vmatprep.mubr.msk.f32.mxu1 %vm4521_vm1, %v4522_v13 }
 0x20a   : > { %4181 = vmatprep.subr.bf16.mxu1 %v4520_v11 }
 0x210   : > { %4001 = vmatmul.mubr.f32.vlgmr.msra.gmra.mrb[4].mxu1 %v4905_v14 }
 0x211   : > { %4183 = vmatpush3.bf16.msra.mxu1 %v4182_v16  ;;  %4007 = vmatprep.mubr.msk.f32.mxu1 %vm4521_vm1, %v4522_v13 }
 0x212   : > { %4184 = vmatprep.subr.bf16.mxu1 %v4520_v11 }
 0x218   : > { %4008 = vmatmul.mubr.f32.vlgmr.msra.gmra.mrb[4].mxu1 %v4908_v15 }
 0x219   : > { %4186 = vmatpush3.bf16.msra.mxu1 %v4950_v63  ;;  %4014 = vmatprep.mubr.msk.f32.mxu1 %vm4521_vm1, %v4522_v13 }
 0x21a   : > { %4187 = vmatprep.subr.bf16.mxu1 %v4520_v11 }
 0x220   : > { %4015 = vmatmul.mubr.f32.vlgmr.msra.gmra.mrb[4].mxu1 %v4911_v17 }
 0x221   : > { %4189 = vmatpush3.bf16.msra.mxu1 %v4971_v12  ;;  %4021 = vmatprep.mubr.msk.f32.mxu1 %vm4521_vm1, %v4522_v13 }
 0x222   : > { %4190 = vmatprep.subr.bf16.mxu1 %v4520_v11 }
 0x228   : > { %4022 = vmatmul.mubr.f32.vlgmr.msra.gmra.mrb[4].mxu1 %v4905_v14 }
 0x229   : > { %4192 = vmatpush3.bf16.msra.mxu1 %v4950_v63  ;;  %4028 = vmatprep.mubr.msk.f32.mxu1 %vm4521_vm1, %v4522_v13  ;;  %v3490_v63 = vstv %s288_s27 }
 0x22a   : > { %4193 = vmatprep.subr.bf16.mxu1 %v4520_v11 }
 0x230   : > { %4029 = vmatmul.mubr.f32.vlgmr.msra.gmra.mrb[4].mxu1 %v4905_v14 }
 0x231   : > { %4195 = vmatpush3.bf16.msra.mxu1 %v4965_v25  ;;  %4035 = vmatprep.mubr.msk.f32.mxu1 %vm4521_vm1, %v4522_v13 }
 0x232   : > { %4196 = vmatprep.subr.bf16.mxu1 %v4520_v11 }
 0x234   : > { %4036 = vmatmul.mubr.f32.vlgmr.msra.gmra.mrb[6].mxu1 %v4922_v41 }
 0x235   : > { %4198 = vmatpush3.bf16.msra.mxu1 %v4997_v54  ;;  %4042 = vmatprep.mubr.msk.f32.mxu1 %vm4521_vm1, %v4522_v13 }
 0x236   : > { %4199 = vmatprep.subr.bf16.mxu1 %v4520_v11 }
 0x23c   : > { %4043 = vmatmul.mubr.f32.vlgmr.msra.gmra.mrb[6].mxu1 %v4905_v14 }
 0x23d   : > { %4201 = vmatpush3.bf16.msra.mxu1 %v4200_v22  ;;  %4049 = vmatprep.mubr.msk.f32.mxu1 %vm4521_vm1, %v4522_v13 }
 0x23e   : > { %4202 = vmatprep.subr.bf16.mxu1 %v4520_v11 }
 0x244   : > { %4050 = vmatmul.mubr.f32.vlgmr.msra.gmra.mrb[6].mxu1 %v4908_v15 }
 0x245   : > { %4204 = vmatpush3.bf16.msra.mxu1 %v4965_v25  ;;  %4056 = vmatprep.mubr.msk.f32.mxu1 %vm4521_vm1, %v4522_v13 }
 0x246   : > { %4205 = vmatprep.subr.bf16.mxu1 %v4520_v11 }
 0x24c   : > { %4057 = vmatmul.mubr.f32.vlgmr.msra.gmra.mrb[6].mxu1 %v4911_v17 }
 0x24d   : > { %4207 = vmatpush3.bf16.msra.mxu1 %v4988_v43  ;;  %4063 = vmatprep.mubr.msk.f32.mxu1 %vm4521_vm1, %v4522_v13 }
 0x24e   : > { %4208 = vmatprep.subr.bf16.mxu1 %v4520_v11 }
 0x254   : > { %4064 = vmatmul.mubr.f32.vlgmr.msra.gmra.mrb[6].mxu1 %v4905_v14 }
 0x255   : > { %4210 = vmatpush3.bf16.msra.mxu1 %v4965_v25  ;;  %4070 = vmatprep.mubr.msk.f32.mxu1 %vm4521_vm1, %v4522_v13 }
 0x256   : > { %4211 = vmatprep.subr.bf16.mxu1 %v4520_v11 }
 0x25c   : > { %4071 = vmatmul.mubr.f32.vlgmr.msra.gmra.mrb[6].mxu1 %v4905_v14 }
 0x25d   : > { %4213 = vmatpush3.bf16.msra.mxu1 %v4983_v37  ;;  %4077 = vmatprep.mubr.msk.f32.mxu1 %vm4521_vm1, %v4522_v13 }
 0x25e   : > { %4214 = vmatprep.subr.bf16.mxu1 %v4520_v11 }
 0x260   : > { %4078 = vmatmul.mubr.f32.vlgmr.msra.gmra.mrb[8].mxu1 %v4922_v41 }
 0x261   : > { %4216 = vmatpush3.bf16.msra.mxu1 %v5004_v57  ;;  %4084 = vmatprep.mubr.msk.f32.mxu1 %vm4521_vm1, %v4522_v13 }
 0x262   : > { %4217 = vmatprep.subr.bf16.mxu1 %v4520_v11 }
 0x268   : > { %4085 = vmatmul.mubr.f32.vlgmr.msra.gmra.mrb[8].mxu1 %v4905_v14 }
 0x269   : > { %4219 = vmatpush3.bf16.msra.mxu1 %v4218_v47  ;;  %4091 = vmatprep.mubr.msk.f32.mxu1 %vm4521_vm1, %v4522_v13 }
 0x26a   : > { %4220 = vmatprep.subr.bf16.mxu1 %v4520_v11 }
 0x270   : > { %4092 = vmatmul.mubr.f32.vlgmr.msra.gmra.mrb[8].mxu1 %v4908_v15 }
 0x271   : > { %4222 = vmatpush3.bf16.msra.mxu1 %v4983_v37  ;;  %4098 = vmatprep.mubr.msk.f32.mxu1 %vm4521_vm1, %v4522_v13 }
 0x272   : > { %4223 = vmatprep.subr.bf16.mxu1 %v4520_v11 }
 0x278   : > { %4099 = vmatmul.mubr.f32.vlgmr.msra.gmra.mrb[8].mxu1 %v4911_v17 }
 0x279   : > { %4225 = vmatpush3.bf16.msra.mxu1 %v4995_v53  ;;  %4105 = vmatprep.mubr.msk.f32.mxu1 %vm4521_vm1, %v4522_v13 }
 0x27a   : > { %4226 = vmatprep.subr.bf16.mxu1 %v4520_v11 }
 0x280   : > { %4106 = vmatmul.mubr.f32.vlgmr.msra.gmra.mrb[8].mxu1 %v4905_v14 }
 0x281   : > { %4228 = vmatpush3.bf16.msra.mxu1 %v4983_v37  ;;  %4112 = vmatprep.mubr.msk.f32.mxu1 %vm4521_vm1, %v4522_v13  ;;  %v3485_v13 = vstv %s3624_s30 }
 0x288   : > { %4113 = vmatmul.mubr.f32.vlgmr.msra.gmra.mrb[8].mxu1 %v4905_v14 }
 0x2ab   : > { %v1638_v15 = vpop.f32.mrb[0].mxu1 }
 0x2ac   : > { %v3946_v31 = vpop.f32.mrb[1].mxu1  ;;  %v3478_v17 = vmul.f32 %v1638_v15, %v1638_v15 }
 0x2d7   : > { %v2097_v41 = vpop.f32.mrb[2].mxu1 }
 0x2d8   : > { %v3479_v46 = vmul.f32 %v2097_v41, %v2097_v41  ;;  %v3480_v48 = vmul.f32 %v2097_v41, %v1638_v15  ;;  %v3988_v49 = vpop.f32.mrb[3].mxu1 }
 0x2da   : > { %v3493_v51 = vadd.f32 %v3479_v46, %v3478_v17  ;;  %v3489_v6 = vmul.f32 2.0, %v3480_v48 }
 0x2dc   : > { %v3494_v14 = vadd.f32 %v3493_v51, %v3490_v63  ;;  %v3491_v21 = vadd.f32 %v3490_v63, %v3489_v6 }
 0x303   : > { %v2556_v58 = vpop.f32.mrb[4].mxu1 }
 0x304   : > { %v3481_v59 = vsub.f32 %v2556_v58, %v3478_v17  ;;  %v4030_v11 = vpop.f32.mrb[5].mxu1 }
 0x32f   : > { %v3015_v60 = vpop.f32.mrb[6].mxu1 }
 0x330   : > { %v3482_v61 = vsub.f32 %v3015_v60, %v3479_v46  ;;  %v4072_v62 = vpop.f32.mrb[7].mxu1 }
 0x332   : > { %v3487_v0 = vadd.f32 %v3482_v61, %v3481_v59 }
 0x334   : > { %v3488_v1 = vadd.f32 %v3487_v0, %v3485_v13 }
 0x336   : > { %v3495_v2 = vmul.f32 %v3494_v14, %v3488_v1 }
 0x338   : > { %4396 = vrcp.f32 %v3495_v2 }
 0x342   : > { %v4397_v3 = vpop.eup %4396 }
 0x343   : > { %v3497_v4 = vmul.f32 %v4397_v3, %v3495_v2 }
 0x345   : > { %v3498_v16 = vsub.f32 2.0, %v3497_v4 }
 0x347   : > { %v3499_v24 = vmul.f32 %v4397_v3, %v3498_v16 }
 0x35b   : > { %v3474_v5 = vpop.f32.mrb[8].mxu1 }
 0x35c   : > { %v3483_v7 = vsub.f32 %v3474_v5, %v3480_v48  ;;  %v4114_v9 = vpop.f32.mrb[9].mxu1 }
 0x35e   : > { %v3484_v10 = vmul.f32 2.0, %v3483_v7 }
 0x360   : > { %v3486_v20 = vadd.f32 %v3485_v13, %v3484_v10 }
 0x362   : > { %v3492_v23 = vmul.f32 %v3491_v21, %v3486_v20 }
 0x364   : > { %v3500_v25 = vmul.f32 %v3499_v24, %v3492_v23 }
 0x366   : > { %v3502_v26 = vsel %vm3501_vm2, %v3500_v25, 0.0 }
 0x367   : > { %3503 = vadd.xlane.f32.xlu0 %v3502_v26 }
 0x3f4   : > { %v3504_v30 = vpop.xlane.xlu0 %3503 }
 0x3f5   : > { %v3505_v32 = vrot.slane %v3504_v30, 4 }
 0x3f7   : > { %v3506_v33 = vadd.f32 %v3505_v32, %v3504_v30 }
 0x3f9   : > { %v3507_v34 = vrot.slane %v3506_v33, 2 }
 0x3fb   : > { %v3508_v35 = vadd.f32 %v3507_v34, %v3506_v33 }
 0x3fd   : > { %v3509_v8 = vrot.slane %v3508_v35, 1 }
 0x3ff   : > { %v3510_v12 = vadd.f32 %v3509_v8, %v3508_v35 }
 0x401   : > { %4329 = vpush %v3510_v12 }
 0x432   : > { %s4330_s9 = spop %4329 }
 0x433   : > { %v3512_v18 = vstv %s4330_s9 }
 0x434   : > { %3514 = vst.msk [vmem:[%s287_s7] sm:$0x1] %vm3513_vm3, %v3512_v18 }
 0x435 PF: > { %p17_p10 = scmp.ge.s32.totalorder %s4575_s23, 4   ;;  %s5177_s18 = smov %s4505_s19 }
 0x436   : > { %s5178_s19 = smov %s4509_s20  ;;  %s5179_s20 = smov %s4585_s26 }
 0x437   : > { %s5180_s21 = smov %s4575_s23  ;;  %19 = sbr.rel (!%p17_p10) target bundleno = 5 (0x5), region = 93 }
 0x43e   :  { %3532 = vsyncpa [#allocation3], 1 }
 0x43f   :  { %3534 = vsyncpa [#allocation3 + $0x1], 1 }
 0x440   :  { %3535 = vsyncpa [#allocation7], 1 }
 0x441   :  { %3537 = vsyncpa [#allocation7 + $0x1], 1 }
 0x442   :  { %3538 = vsyncpa [#allocation4], 1 }
 0x443   :  { %3540 = vsyncpa [#allocation4 + $0x1], 1 }

</bundles_post_ra>
